<compile_context>
chip_gen: v5e
topology: v5e:2x2
jax: 0.10.0
libtpu: 0.0.40
codegen_flags: <defaults>
</compile_context>

<pallas_src>
import jax
import jax.numpy as jnp
from jax.experimental import pallas as pl
from jax.experimental.pallas import tpu as pltpu


DEFAULT_TM = 512
DEFAULT_TN = 512
DEFAULT_TK = 1024

_SCOPED_VMEM_DEFAULT = 32 * 1024 * 1024  # conservative scoped-VMEM default


def _round_up(x, m):
    return ((x + m - 1) // m) * m


def linear_kernel(x_ref, w_ref, b_ref, o_ref):
    # x_ref: (tm, tk)   w_ref: (tk, tn)  (pre-transposed weight)
    # b_ref: (1, tn)    o_ref: (tm, tn)  f32, resident across the k axis
    k = pl.program_id(2)

    @pl.when(k == 0)
    def _():
        # Initialize the resident output tile with the bias (broadcast over the
        # row dim). No separate finalize pass / scratch accumulator needed.
        o_ref[...] = jnp.broadcast_to(b_ref[...], o_ref.shape).astype(o_ref.dtype)

    # Plain MN x NK dot — MXU consumes both tiles directly, f32 accumulation.
    o_ref[...] += jnp.dot(
        x_ref[...], w_ref[...], preferred_element_type=jnp.float32
    )


def prepare_linear_params(weight, bias, *, tn=DEFAULT_TN, tk=DEFAULT_TK,
                          mxu_dtype=None):
    """One-time layout plumbing (call once at model init, NOT per forward).

    Transposes W from the PyTorch (D_out, D_in) layout to (D_in, D_out),
    zero-pads to lane-aligned (K, N) and casts to the MXU feed dtype.
    """
    D_out, D_in = weight.shape
    mxu_dtype = weight.dtype if mxu_dtype is None else mxu_dtype

    tn = min(tn, _round_up(D_out, 128))
    tk = min(tk, _round_up(D_in, 128))
    K = _round_up(D_in, tk)
    N = _round_up(D_out, tn)

    w_t = weight.T.astype(mxu_dtype)
    if K != D_in or N != D_out:
        w_t = jnp.pad(w_t, ((0, K - D_in), (0, N - D_out)))
    b_p = jnp.pad(bias.astype(jnp.float32), (0, N - D_out)).reshape(1, N)

    return {
        "w_t": w_t, "b": b_p,
        "d_in": D_in, "d_out": D_out,
        "tn": tn, "tk": tk,
        "mxu_dtype": jnp.dtype(mxu_dtype),
    }


def linear_forward(x, params, *, tm=DEFAULT_TM, vmem_limit_bytes=None):
    """Exact nn.Linear semantics: y = x @ weight.T + bias (f32 output)."""
    B, D_in = x.shape
    assert D_in == params["d_in"], "input feature dim mismatch"

    w_t, b_p = params["w_t"], params["b"]
    tn, tk = params["tn"], params["tk"]
    mxu_dtype = params["mxu_dtype"]
    K, N = w_t.shape

    # Sublane alignment: 8 for 32-bit, 16 for 16-bit (bf16) MXU feeds.
    sub = 16 if mxu_dtype.itemsize == 2 else 8
    tm = min(tm, _round_up(B, sub))
    M = _round_up(B, tm)

    # v7x has 2 TensorCores: if the batch only yields one row tile, split the
    # N axis so the grid exposes >= 2 parallel output tiles.
    if M // tm == 1 and N // tn < 2 and N % 256 == 0:
        tn = N // 2

    # Pad only x (the small operand); W/b were padded once at init.
    x_p = x.astype(mxu_dtype)
    if M != B or K != D_in:
        x_p = jnp.pad(x_p, ((0, M - B), (0, K - D_in)))

    # Raise the scoped-VMEM limit only if the chosen tiles actually need it
    # (e.g. 1024-class tiles on v5e/v6e). Keep configs <= ~48 MiB on v7x
    # (64 MiB physical per TensorCore).
    est_bytes = (2 * (tm * tk + tk * tn) * mxu_dtype.itemsize   # x/w double-buffered
                 + 2 * tm * tn * 4                              # output double-buffered
                 + 2 * tn * 4)                                  # bias
    if vmem_limit_bytes is None and est_bytes > _SCOPED_VMEM_DEFAULT:
        vmem_limit_bytes = min(int(est_bytes * 3 // 2), 100 * 1024 * 1024)

    grid = (N // tn, M // tm, K // tk)  # (j, i, k): weight index fixed across i

    out = pl.pallas_call(
        linear_kernel,
        out_shape=jax.ShapeDtypeStruct((M, N), jnp.float32),
        grid_spec=pltpu.PrefetchScalarGridSpec(
            num_scalar_prefetch=0,
            grid=grid,
            in_specs=[
                # x tile streams along batch + K.
                # (If profiling on v5e shows exposed DMA, add
                #  pipeline_mode=pl.Buffered(3) here.)
                pl.BlockSpec((tm, tk), lambda j, i, k: (i, k)),
                # Pre-transposed weight tile: index (k, j) is constant across
                # consecutive i steps -> with K//tk == 1 it is DMA'd once.
                pl.BlockSpec((tk, tn), lambda j, i, k: (k, j)),
                # Bias tile depends only on j.
                pl.BlockSpec((1, tn), lambda j, i, k: (0, j)),
            ],
            out_specs=pl.BlockSpec((tm, tn), lambda j, i, k: (i, j)),
        ),
        compiler_params=pltpu.CompilerParams(
            # N / batch tiles are independent (megacore-shardable on v7x);
            # K is the reduction axis (accumulates into the resident output).
            dimension_semantics=("parallel", "parallel", "arbitrary"),
            vmem_limit_bytes=vmem_limit_bytes,
        ),
    )(x_p, w_t, b_p)

    if M == B and N == params["d_out"]:
        return out
    return out[:B, :params["d_out"]]


if __name__ == "__main__":
    # Deterministic parameters / inputs (small shapes consistent with the module).
    input_dim = 32
    output_dim = 16
    batch = 8

    key = jax.random.PRNGKey(0)
    kx, kw, kb = jax.random.split(key, 3)

    x = jax.random.normal(kx, (batch, input_dim), dtype=jnp.float32)
    # nn.Linear default init: uniform(-1/sqrt(fan_in), 1/sqrt(fan_in)).
    bound = 1.0 / (input_dim ** 0.5)
    weight = jax.random.uniform(
        kw, (output_dim, input_dim), dtype=jnp.float32, minval=-bound, maxval=bound
    )
    bias = jax.random.uniform(
        kb, (output_dim,), dtype=jnp.float32, minval=-bound, maxval=bound
    )

    y_ref = x @ weight.T + bias

    # --- f32 MXU feed (bit-faithful to the nn.Linear module) ---
    params_f32 = prepare_linear_params(weight, bias)          # one-time, at "init"
    y = jax.block_until_ready(linear_forward(x, params_f32))
    assert y.shape == (batch, output_dim)
    assert jnp.allclose(y, y_ref, atol=1e-5, rtol=1e-5)

    # --- bf16 MXU feed (perf path: bf16 operands, f32 accumulation + bias) ---
    params_bf16 = prepare_linear_params(weight, bias, mxu_dtype=jnp.bfloat16)
    y_bf16 = jax.block_until_ready(linear_forward(x, params_bf16))
    assert y_bf16.shape == (batch, output_dim)
    assert jnp.allclose(y_bf16, y_ref, atol=5e-2, rtol=5e-2)

    print("KERNEL_OK")
</pallas_src>

<mosaic_0001>
module attributes {stable_mosaic.version = 11 : i64} {
  func.func @linear_kernel(%arg0: i32, %arg1: i32, %arg2: i32, %arg3: memref<8x128xf32, #tpu.memory_space<vmem>>, %arg4: memref<128x128xf32, #tpu.memory_space<vmem>>, %arg5: memref<1x128xf32, #tpu.memory_space<vmem>>, %arg6: memref<8x128xf32, #tpu.memory_space<vmem>>) attributes {dimension_semantics = [#tpu.dimension_semantics<parallel>, #tpu.dimension_semantics<parallel>, #tpu.dimension_semantics<arbitrary>], iteration_bounds = array<i64: 1, 1, 1>, scalar_prefetch = 0 : i64, scratch_operands = 0 : i64, tpu.core_type = #tpu.core_type<tc>, window_params = [{transform_indices = @transform_0, window_bounds = array<i64: 8, 128>}, {transform_indices = @transform_1, window_bounds = array<i64: 128, 128>}, {transform_indices = @transform_2, window_bounds = array<i64: 1, 128>}, {transform_indices = @transform_3, window_bounds = array<i64: 8, 128>}]} {
    %c0_i32 = arith.constant 0 : i32
    %0 = arith.cmpi eq, %arg2, %c0_i32 : i32
    %1 = arith.extui %0 : i1 to i32
    %c0_i32_0 = arith.constant 0 : i32
    %2 = arith.cmpi ne, %1, %c0_i32_0 : i32
    scf.if %2 {
      %c0_8 = arith.constant 0 : index
      %c0_9 = arith.constant 0 : index
      %9 = vector.load %arg5[%c0_8, %c0_9] : memref<1x128xf32, #tpu.memory_space<vmem>>, vector<1x128xf32>
      %10 = vector.shape_cast %9 : vector<1x128xf32> to vector<1x128xf32>
      %11 = vector.broadcast %10 : vector<1x128xf32> to vector<8x128xf32>
      %c0_10 = arith.constant 0 : index
      %c0_11 = arith.constant 0 : index
      %12 = vector.load %arg6[%c0_10, %c0_11] : memref<8x128xf32, #tpu.memory_space<vmem>>, vector<8x128xf32>
      tpu.vector_store %arg6[%c0_10, %c0_11], %11 {strides = array<i32>} : memref<8x128xf32, #tpu.memory_space<vmem>>, vector<8x128xf32>,
    } else {
    }
    %c0 = arith.constant 0 : index
    %c0_1 = arith.constant 0 : index
    %3 = vector.load %arg6[%c0, %c0_1] : memref<8x128xf32, #tpu.memory_space<vmem>>, vector<8x128xf32>
    %c0_2 = arith.constant 0 : index
    %c0_3 = arith.constant 0 : index
    %4 = vector.load %arg3[%c0_2, %c0_3] : memref<8x128xf32, #tpu.memory_space<vmem>>, vector<8x128xf32>
    %c0_4 = arith.constant 0 : index
    %c0_5 = arith.constant 0 : index
    %5 = vector.load %arg4[%c0_4, %c0_5] : memref<128x128xf32, #tpu.memory_space<vmem>>, vector<128x128xf32>
    %cst = arith.constant dense<0.000000e+00> : vector<8x128xf32>
    %6 = tpu.matmul %4, %5, %cst {dimension_numbers = #tpu.dot_dimension_numbers<[1], [0], [0], [1], [0, 0, 1, 1], [], []>} : vector<8x128xf32>, vector<128x128xf32>, vector<8x128xf32> -> vector<8x128xf32>
    %7 = arith.addf %3, %6 : vector<8x128xf32>
    %c0_6 = arith.constant 0 : index
    %c0_7 = arith.constant 0 : index
    %8 = vector.load %arg6[%c0_6, %c0_7] : memref<8x128xf32, #tpu.memory_space<vmem>>, vector<8x128xf32>
    tpu.vector_store %arg6[%c0_6, %c0_7], %7 {strides = array<i32>} : memref<8x128xf32, #tpu.memory_space<vmem>>, vector<8x128xf32>,
    return
  }
  func.func @transform_0(%arg0: i32, %arg1: i32, %arg2: i32) -> (i32, i32) {
    %c0_i32 = arith.constant 0 : i32
    return %arg1, %arg2 : i32, i32
  }
  func.func @transform_1(%arg0: i32, %arg1: i32, %arg2: i32) -> (i32, i32) {
    %c0_i32 = arith.constant 0 : i32
    return %arg2, %arg0 : i32, i32
  }
  func.func @transform_2(%arg0: i32, %arg1: i32, %arg2: i32) -> (i32, i32) {
    %c0_i32 = arith.constant 0 : i32
    %c0_i32_0 = arith.constant 0 : i32
    return %c0_i32, %arg0 : i32, i32
  }
  func.func @transform_3(%arg0: i32, %arg1: i32, %arg2: i32) -> (i32, i32) {
    %c0_i32 = arith.constant 0 : i32
    return %arg1, %arg0 : i32, i32
  }
}

</mosaic_0001>

<bundles_post_ra>
// kernel: tpu_custom_call.1
= control target key start
LH: loop header
LB: loop body
LE: loop exit
PB: predicated region body
PF: predicated region fallthrough
CT: control target
= control target key end

     0   :  { %8 = vsyncpa [#allocation3], 0  ;;  %s233_s0 = inlined_call_operand.hbm [shape: f32[8,128], index: 0, kind: input, shape index: {}]   ;;  %s234_s1 = inlined_call_operand.hbm [shape: f32[128,128], index: 1, kind: input, shape index: {}]   ;;  %s235_s2 = inlined_call_operand.vmem [shape: f32[1,128], index: 2, kind: input, shape index: {}]   ;;  %s236_s3 = inlined_call_operand.hbm [shape: f32[8,128], index: 3, kind: output, shape index: {}]  }
   0x1   :  { %9 = vsyncpa [#allocation6], 0 }
   0x2   :  { %10 = vsyncpa [#allocation4], 0  ;;  %s16_s14 = sshll.u32 %s233_s0, 4  ;;  %s196_s15 = smov [#allocation2]   ;;  %s17_s14 = int_to_ptr.hbm [resolvable:$true] %s16_s14 }
   0x3   :  { %s18_s16 = sshll.u32 %s196_s15, 4  ;;  %s26_s19 = sshll.u32 %s234_s1, 4  ;;  %s19_s16 = int_to_ptr.vmem [resolvable:$true] %s18_s16  ;;  %s27_s19 = int_to_ptr.hbm [resolvable:$true] %s26_s19 }
   0x4   :  { %21 = dma.hbm_to_vmem [thread:$0]  %s17_s14, 128, %s19_s16, [#allocation3]  }
   0x5   :  { %s197_s20 = smov [#allocation5]   ;;  %s198_s22 = smov 128  }
   0x6   :  { %s28_s21 = sshll.u32 %s197_s20, 4  ;;  %s199_s23 = smov 8   ;;  %s29_s21 = int_to_ptr.vmem [resolvable:$true] %s28_s21 }
   0x7   :  { %34 = dma.hbm_to_vmem [thread:$0]  %s27_s19, 2048, %s29_s21, [#allocation6], %s198_s22, %s198_s22, %s199_s23  }
   0x8   :  { %190 = dma.done.wait [#allocation3], 128  }
   0x9   :  { %191 = vsyncadd [#allocation3], 4294967168 }
   0xa   :  { %192 = dma.done.wait [#allocation6], 2048  }
   0xb   :  { %193 = vsyncadd [#allocation6], 4294965248  ;;  %v71_v0 = vld [vmem:[#allocation5 + $0x78] sm:$0xff]  ;;  %v70_v1 = vld [vmem:[#allocation5 + $0x70] sm:$0xff]  ;;  %s200_s24 = smov [#allocation7]   ;;  %s101_s28 = sshll.u32 %s236_s3, 4  ;;  %s102_s28 = int_to_ptr.hbm [resolvable:$true] %s101_s28 }
   0xc   :  { %72 = vmatpush.msra.mxu0 %v71_v0  ;;  %v69_v2 = vld [vmem:[#allocation5 + $0x68] sm:$0xff]  ;;  %v68_v3 = vld [vmem:[#allocation5 + $0x60] sm:$0xff]  ;;  %v67_v4 = vld [vmem:[#allocation5 + $0x58] sm:$0xff]  ;;  %s99_s25 = sshll.u32 %s200_s24, 4  ;;  %s100_s25 = int_to_ptr.vmem [resolvable:$true] %s99_s25 }
   0xd   :  { %v66_v5 = vld [vmem:[#allocation5 + $0x50] sm:$0xff]  ;;  %v65_v6 = vld [vmem:[#allocation5 + $0x48] sm:$0xff]  ;;  %v64_v7 = vld [vmem:[#allocation5 + $0x40] sm:$0xff] }
   0xe   :  { %73 = vmatpush.msra.mxu0 %v70_v1  ;;  %v63_v8 = vld [vmem:[#allocation5 + $0x38] sm:$0xff]  ;;  %v62_v9 = vld [vmem:[#allocation5 + $0x30] sm:$0xff]  ;;  %v61_v10 = vld [vmem:[#allocation5 + $0x28] sm:$0xff] }
   0xf   :  { %v60_v11 = vld [vmem:[#allocation5 + $0x20] sm:$0xff]  ;;  %v59_v12 = vld [vmem:[#allocation5 + $0x18] sm:$0xff]  ;;  %v58_v13 = vld [vmem:[#allocation5 + $0x10] sm:$0xff] }
  0x10   :  { %74 = vmatpush.msra.mxu0 %v69_v2  ;;  %v57_v14 = vld [vmem:[#allocation5 + $0x8] sm:$0xff]  ;;  %v56_v15 = vld [vmem:[#allocation5] sm:$0xff]  ;;  %v55_v16 = vld [vmem:[#allocation2] sm:$0xff] }
  0x11   :  { %v117_v17 = vld [vmem:[%s235_s2] ss:$0 sm:$0xff] }
  0x12   :  { %75 = vmatpush.msra.mxu0 %v68_v3 }
  0x14   :  { %76 = vmatpush.msra.mxu0 %v67_v4 }
  0x16   :  { %77 = vmatpush.msra.mxu0 %v66_v5 }
  0x18   :  { %78 = vmatpush.msra.mxu0 %v65_v6 }
  0x1a   :  { %79 = vmatpush.msra.mxu0 %v64_v7 }
  0x1c   :  { %80 = vmatpush.msra.mxu0 %v63_v8 }
  0x1e   :  { %81 = vmatpush.msra.mxu0 %v62_v9 }
  0x20   :  { %82 = vmatpush.msra.mxu0 %v61_v10 }
  0x22   :  { %83 = vmatpush.msra.mxu0 %v60_v11 }
  0x24   :  { %84 = vmatpush.msra.mxu0 %v59_v12 }
  0x26   :  { %85 = vmatpush.msra.mxu0 %v58_v13 }
  0x28   :  { %86 = vmatpush.msra.mxu0 %v57_v14 }
  0x2a   :  { %87 = vmatpush.msra.mxu0 %v56_v15 }
  0x2b   :  { %88 = vmatmul.f32.vlgmr.msra.gmra.mxu0 %v55_v16 }
  0xa8   :  { %v89_v18 = vpop.f32.mrf.mxu0 }
  0xa9   :  { %v92_v19 = vadd.f32 %v117_v17, %v89_v18 }
  0xab   :  { %93 = vst [vmem:[#allocation7] sm:$0xff] %v92_v19 }
  0xac   :  { %104 = dma.vmem_to_hbm [thread:$0]  %s100_s25, 128, %s102_s28, [#allocation4]  }
  0xad   :  { %194 = dma.done.wait [#allocation4], 128  }
  0xae   :  { %195 = vsyncadd [#allocation4], 4294967168 }
  0xaf   :  { %109 = vsyncpa [#allocation3], 1 }
  0xb0   :  { %110 = vsyncpa [#allocation6], 1 }
  0xb1   :  { %111 = vsyncpa [#allocation4], 1 }

</bundles_post_ra>
